<compile_context>
chip_gen: v7x
topology: tpu7x:2x2x1
jax: 0.10.0
libtpu: 0.0.40
codegen_flags: <defaults>
</compile_context>

<pallas_src>
import jax
import jax.numpy as jnp
from jax.experimental import pallas as pl
from jax.experimental.pallas import tpu as pltpu


# Stay under the default scoped-VMEM limit on every generation (16 MiB on v5e,
# 32 MiB on v6e/v7x), leaving headroom for double buffering and f32 temporaries.
_VMEM_BUDGET_BYTES = 12 * 1024 * 1024


# ------------------------------------------------------------------ fused kernel


def _fused_kernel(g_ref, x_ref, w1g_ref, w1x_ref, b1_ref, w2_ref, b2_ref,
                  wf_ref, beff_ref, o_ref):
    """grid = (B,).  One batch element per step; whole (C, S) slab resident in VMEM.

    pool -> tiny MLP -> dynamic weights folded with psi/BN -> gate,
    fused so g/x are read from HBM exactly once.
    """
    g3 = g_ref[...].astype(jnp.float32)              # (1, Fg, S)
    x3 = x_ref[...].astype(jnp.float32)              # (1, Fl, S)
    inv_s = 1.0 / g3.shape[-1]

    # AdaptiveAvgPool3d(1) over the flattened spatial axis.
    pg = jnp.sum(g3, axis=-1) * inv_s                # (1, Fg)
    px = jnp.sum(x3, axis=-1) * inv_s                # (1, Fl)

    # W: Conv1x1 -> ReLU -> Conv1x1 -> Sigmoid on the pooled vector.
    h = jax.nn.relu(
        jnp.dot(pg, w1g_ref[...], preferred_element_type=jnp.float32)
        + jnp.dot(px, w1x_ref[...], preferred_element_type=jnp.float32)
        + b1_ref[...])                               # (1, F_int)
    dyn = jax.nn.sigmoid(
        jnp.dot(h, w2_ref[...], preferred_element_type=jnp.float32)
        + b2_ref[...])                               # (1, Fg*Fl)

    # Collapse psi's 1x1 conv (+ folded BN scale) into the dynamic weights:
    #   v[g] = sum_l w_eff[l] * dw[g, l]   =>   lin[s] = sum_g v[g] * g[g, s]
    v = jnp.dot(dyn, wf_ref[...], preferred_element_type=jnp.float32)   # (1, Fg)

    lin = jnp.dot(v, g3[0], preferred_element_type=jnp.float32) + beff_ref[...]
    psi = jax.nn.sigmoid(lin)                        # (1, S)
    o_ref[0] = (x3[0] * psi).astype(o_ref.dtype)


# ------------------------------------------------------------------ two-pass kernels


def _pool_kernel(g_ref, x_ref, gs_ref, xs_ref):
    """grid = (B, S_tiles).  Accumulate spatial sums per batch element (f32)."""
    @pl.when(pl.program_id(1) == 0)
    def _():
        gs_ref[...] = jnp.zeros_like(gs_ref)
        xs_ref[...] = jnp.zeros_like(xs_ref)

    gs_ref[...] += jnp.sum(g_ref[...].astype(jnp.float32), axis=-1)[:, None, :]
    xs_ref[...] += jnp.sum(x_ref[...].astype(jnp.float32), axis=-1)[:, None, :]


def _attend_kernel(g_ref, x_ref, v_ref, b_ref, o_ref):
    """grid = (B, S_tiles).  lin = v @ g tile; out = x * sigmoid(lin + b)."""
    g = g_ref[0].astype(jnp.float32)                                    # (Fg, tS)
    lin = jnp.dot(v_ref[0], g, preferred_element_type=jnp.float32)      # (1, tS)
    psi = jax.nn.sigmoid(lin + b_ref[...])
    o_ref[0] = (x_ref[0].astype(jnp.float32) * psi).astype(o_ref.dtype)


# ------------------------------------------------------------------ wrapper


def _pick_tile_s(S, per_lane_bytes, budget=_VMEM_BUDGET_BYTES):
    """Largest spatial tile (lanes) whose buffering stays under the VMEM budget."""
    cap = max(128, budget // per_lane_bytes)
    if S <= cap:
        return S                      # full spatial extent in one block
    t = (min(cap, S) // 128) * 128
    while t >= 128:
        if S % t == 0:
            return t
        t -= 128
    # TODO(synk): ragged S (not a multiple of 128) larger than the VMEM cap would
    # need a masked final tile; not implemented.
    raise ValueError(f"cannot tile spatial extent {S} within the VMEM budget")


def dynamic_conv_attention_3d(g, x, p, *, force_two_pass=False, tile_s=None):
    B, F_g, D, H, W = g.shape
    F_l = x.shape[1]
    F_int = p["W1"].shape[0]
    S = D * H * W

    # Keep HBM copies in the input dtype; cast to f32 inside the kernels.
    g2 = g.reshape(B, F_g, S)
    x2 = x.reshape(B, F_l, S)

    # Fold eval-mode BatchNorm into psi's 1x1 conv (scale / shift).
    # TODO(synk): training-mode BatchNorm (batch statistics) is not modeled;
    # eval-mode running statistics are used instead.
    scale = p["bn_gamma"] / jnp.sqrt(p["bn_var"] + p["bn_eps"])
    w_eff = p["psi_w"].astype(jnp.float32) * scale                       # (1, Fl)
    b_eff = p["psi_b"][0] * scale + p["bn_beta"] - p["bn_mean"] * scale
    b_eff = jnp.asarray(b_eff, jnp.float32).reshape(1, 1)

    # Approximate VMEM bytes per spatial lane: double-buffered inputs + output
    # plus the f32 in-kernel temporaries.
    per_lane = (2 * F_g * g.dtype.itemsize
                + 2 * F_l * x.dtype.itemsize
                + 2 * F_l * x.dtype.itemsize
                + (F_g + 2 * F_l) * 4)
    use_fused = (not force_two_pass) and (per_lane * S <= _VMEM_BUDGET_BYTES)

    if use_fused:
        # ---- single fused pallas_call per batch element: g/x read once -------
        W1 = p["W1"].astype(jnp.float32)                                  # (F_int, C)
        w1gT = jnp.transpose(W1[:, :F_g])                                 # (Fg, F_int)
        w1xT = jnp.transpose(W1[:, F_g:])                                 # (Fl, F_int)
        b1 = p["b1"].astype(jnp.float32).reshape(1, F_int)
        w2T = jnp.transpose(p["W2"].astype(jnp.float32))                  # (F_int, Fg*Fl)
        b2 = p["b2"].astype(jnp.float32).reshape(1, F_g * F_l)
        # W_fold[g*Fl + l, gg] = (gg == g) * w_eff[l]  (collapses psi into v = dyn @ W_fold)
        w_fold = (jnp.eye(F_g, dtype=jnp.float32)[:, None, :]
                  * w_eff.reshape(1, F_l, 1)).reshape(F_g * F_l, F_g)

        out = pl.pallas_call(
            _fused_kernel,
            out_shape=jax.ShapeDtypeStruct((B, F_l, S), x.dtype),
            grid_spec=pltpu.PrefetchScalarGridSpec(
                num_scalar_prefetch=0,
                grid=(B,),
                in_specs=[pl.BlockSpec((1, F_g, S), lambda b: (b, 0, 0)),
                          pl.BlockSpec((1, F_l, S), lambda b: (b, 0, 0)),
                          pl.BlockSpec((F_g, F_int), lambda b: (0, 0)),
                          pl.BlockSpec((F_l, F_int), lambda b: (0, 0)),
                          pl.BlockSpec((1, F_int), lambda b: (0, 0)),
                          pl.BlockSpec((F_int, F_g * F_l), lambda b: (0, 0)),
                          pl.BlockSpec((1, F_g * F_l), lambda b: (0, 0)),
                          pl.BlockSpec((F_g * F_l, F_g), lambda b: (0, 0)),
                          pl.BlockSpec((1, 1), lambda b: (0, 0))],
                out_specs=pl.BlockSpec((1, F_l, S), lambda b: (b, 0, 0))),
            compiler_params=pltpu.CompilerParams(
                dimension_semantics=("parallel",)),
        )(g2, x2, w1gT, w1xT, b1, w2T, b2, w_fold, b_eff)
        return out.reshape(B, F_l, D, H, W)

    # ---- fallback: two-pass (pool reduction -> glue MLP -> attend/gate) ------
    if tile_s is None:
        tile_s = _pick_tile_s(S, per_lane)
    assert S % tile_s == 0, "tile_s must divide the flattened spatial extent"
    n_s = S // tile_s

    gs, xs = pl.pallas_call(
        _pool_kernel,
        out_shape=(jax.ShapeDtypeStruct((B, 1, F_g), jnp.float32),
                   jax.ShapeDtypeStruct((B, 1, F_l), jnp.float32)),
        grid_spec=pltpu.PrefetchScalarGridSpec(
            num_scalar_prefetch=0,
            grid=(B, n_s),
            in_specs=[pl.BlockSpec((1, F_g, tile_s), lambda b, s: (b, 0, s)),
                      pl.BlockSpec((1, F_l, tile_s), lambda b, s: (b, 0, s))],
            out_specs=(pl.BlockSpec((1, 1, F_g), lambda b, s: (b, 0, 0)),
                       pl.BlockSpec((1, 1, F_l), lambda b, s: (b, 0, 0)))),
        compiler_params=pltpu.CompilerParams(
            dimension_semantics=("parallel", "arbitrary")),
    )(g2, x2)

    # Tiny MLP on the pooled (B, C) vector, then collapse psi into v = w_eff @ dw^T.
    pooled = jnp.concatenate([gs[:, 0, :], xs[:, 0, :]], axis=-1) * (1.0 / float(S))
    h = jax.nn.relu(pooled @ p["W1"].astype(jnp.float32).T + p["b1"])
    dyn = jax.nn.sigmoid(h @ p["W2"].astype(jnp.float32).T + p["b2"])
    dw = dyn.reshape(B, F_g, F_l)
    v = jnp.einsum("bgl,l->bg", dw, w_eff[0]).reshape(B, 1, F_g).astype(jnp.float32)

    out = pl.pallas_call(
        _attend_kernel,
        out_shape=jax.ShapeDtypeStruct((B, F_l, S), x.dtype),
        grid_spec=pltpu.PrefetchScalarGridSpec(
            num_scalar_prefetch=0,
            grid=(B, n_s),
            in_specs=[pl.BlockSpec((1, F_g, tile_s), lambda b, s: (b, 0, s)),
                      pl.BlockSpec((1, F_l, tile_s), lambda b, s: (b, 0, s)),
                      pl.BlockSpec((1, 1, F_g), lambda b, s: (b, 0, 0)),
                      pl.BlockSpec((1, 1), lambda b, s: (0, 0))],
            out_specs=pl.BlockSpec((1, F_l, tile_s), lambda b, s: (b, 0, s))),
        compiler_params=pltpu.CompilerParams(
            dimension_semantics=("parallel", "parallel")),
    )(g2, x2, v, b_eff)

    return out.reshape(B, F_l, D, H, W)


# ------------------------------------------------------------------ params & reference


def init_params(key, F_g, F_l, F_int):
    """Deterministic init mimicking PyTorch Conv3d defaults; BN at default stats."""
    C = F_g + F_l
    ks = jax.random.split(key, 6)

    def u(k, shape, fan_in):
        bound = 1.0 / jnp.sqrt(float(fan_in))
        return jax.random.uniform(k, shape, jnp.float32, -bound, bound)

    return dict(
        W1=u(ks[0], (F_int, C), C),             b1=u(ks[1], (F_int,), C),
        W2=u(ks[2], (F_g * F_l, F_int), F_int), b2=u(ks[3], (F_g * F_l,), F_int),
        psi_w=u(ks[4], (1, F_l), F_l),          psi_b=u(ks[5], (1,), F_l),
        bn_gamma=jnp.float32(1.0), bn_beta=jnp.float32(0.0),
        bn_mean=jnp.float32(0.0), bn_var=jnp.float32(1.0),
        bn_eps=jnp.float32(1e-5),
    )


def reference_forward(g, x, p):
    """Pure-JAX replica of the PyTorch forward (eval-mode BN)."""
    B, F_g = g.shape[:2]
    F_l = x.shape[1]
    combined = jnp.concatenate([g, x], axis=1)
    pooled = jnp.mean(combined, axis=(2, 3, 4))                       # (B, C)
    h = jax.nn.relu(pooled @ p["W1"].T + p["b1"])
    dyn = jax.nn.sigmoid(h @ p["W2"].T + p["b2"])
    dw = dyn.reshape(B, F_g, F_l, 1, 1, 1)
    attended = jnp.sum(g[:, :, None] * dw, axis=1)                    # (B, Fl, D, H, W)
    lin = jnp.einsum("ol,blxyz->boxyz", p["psi_w"], attended)
    lin = lin + p["psi_b"][None, :, None, None, None]
    scale = p["bn_gamma"] / jnp.sqrt(p["bn_var"] + p["bn_eps"])
    bn = (lin - p["bn_mean"]) * scale + p["bn_beta"]
    return x * jax.nn.sigmoid(bn)


# ------------------------------------------------------------------ main


if __name__ == "__main__":
    key = jax.random.PRNGKey(0)
    B, F_g, F_l, F_int = 2, 8, 8, 4
    D, H, W = 4, 8, 8                                   # S = 256

    kg, kx, kp = jax.random.split(key, 3)
    g = jax.random.normal(kg, (B, F_g, D, H, W), jnp.float32)
    x = jax.random.normal(kx, (B, F_l, D, H, W), jnp.float32)
    params = init_params(kp, F_g, F_l, F_int)

    ref = reference_forward(g, x, params)

    # Primary path: fully fused (pool + MLP + attention/gating in one kernel).
    out_fused = jax.block_until_ready(dynamic_conv_attention_3d(g, x, params))

    # Fallback path: two-pass pipeline, forced onto two spatial tiles so the
    # pool accumulator (reduction over the 'arbitrary' axis) is exercised.
    out_2pass = jax.block_until_ready(
        dynamic_conv_attention_3d(g, x, params, force_two_pass=True, tile_s=128))

    for name, out in (("fused", out_fused), ("two_pass", out_2pass)):
        assert out.shape == (B, F_l, D, H, W), (name, out.shape)
        max_err = float(jnp.max(jnp.abs(out - ref)))
        if max_err > 1e-4:
            raise AssertionError(f"{name} mismatch vs reference: max_err={max_err}")

    print("KERNEL_OK")
</pallas_src>

<mosaic_0001>
module attributes {stable_mosaic.version = 11 : i64} {
  func.func @_fused_kernel(%arg0: i32, %arg1: memref<1x8x256xf32, #tpu.memory_space<vmem>>, %arg2: memref<1x8x256xf32, #tpu.memory_space<vmem>>, %arg3: memref<8x4xf32, #tpu.memory_space<vmem>>, %arg4: memref<8x4xf32, #tpu.memory_space<vmem>>, %arg5: memref<1x4xf32, #tpu.memory_space<vmem>>, %arg6: memref<4x64xf32, #tpu.memory_space<vmem>>, %arg7: memref<1x64xf32, #tpu.memory_space<vmem>>, %arg8: memref<64x8xf32, #tpu.memory_space<vmem>>, %arg9: memref<1x1xf32, #tpu.memory_space<vmem>>, %arg10: memref<1x8x256xf32, #tpu.memory_space<vmem>>) attributes {dimension_semantics = [#tpu.dimension_semantics<parallel>], iteration_bounds = array<i64: 2>, scalar_prefetch = 0 : i64, scratch_operands = 0 : i64, tpu.core_type = #tpu.core_type<tc>, window_params = [{transform_indices = @transform_0, window_bounds = array<i64: 1, 8, 256>}, {transform_indices = @transform_1, window_bounds = array<i64: 1, 8, 256>}, {pipeline_mode = #tpu.pipeline_mode<synchronous>, transform_indices = @transform_2, window_bounds = array<i64: 8, 4>}, {pipeline_mode = #tpu.pipeline_mode<synchronous>, transform_indices = @transform_3, window_bounds = array<i64: 8, 4>}, {pipeline_mode = #tpu.pipeline_mode<synchronous>, transform_indices = @transform_4, window_bounds = array<i64: 1, 4>}, {pipeline_mode = #tpu.pipeline_mode<synchronous>, transform_indices = @transform_5, window_bounds = array<i64: 4, 64>}, {pipeline_mode = #tpu.pipeline_mode<synchronous>, transform_indices = @transform_6, window_bounds = array<i64: 1, 64>}, {pipeline_mode = #tpu.pipeline_mode<synchronous>, transform_indices = @transform_7, window_bounds = array<i64: 64, 8>}, {pipeline_mode = #tpu.pipeline_mode<synchronous>, transform_indices = @transform_8, window_bounds = array<i64: 1, 1>}, {transform_indices = @transform_9, window_bounds = array<i64: 1, 8, 256>}]} {
    %c0 = arith.constant 0 : index
    %c0_0 = arith.constant 0 : index
    %c0_1 = arith.constant 0 : index
    %0 = vector.load %arg1[%c0, %c0_0, %c0_1] : memref<1x8x256xf32, #tpu.memory_space<vmem>>, vector<1x8x256xf32>
    %c0_2 = arith.constant 0 : index
    %c0_3 = arith.constant 0 : index
    %c0_4 = arith.constant 0 : index
    %1 = vector.load %arg2[%c0_2, %c0_3, %c0_4] : memref<1x8x256xf32, #tpu.memory_space<vmem>>, vector<1x8x256xf32>
    %cst = arith.constant dense<0.000000e+00> : vector<1x8xf32>
    %2 = vector.multi_reduction <add>, %0, %cst [2] : vector<1x8x256xf32> to vector<1x8xf32>
    %cst_5 = arith.constant 3.906250e-03 : f32
    %3 = vector.broadcast %cst_5 : f32 to vector<1x8xf32>
    %4 = arith.mulf %2, %3 : vector<1x8xf32>
    %cst_6 = arith.constant dense<0.000000e+00> : vector<1x8xf32>
    %5 = vector.multi_reduction <add>, %1, %cst_6 [2] : vector<1x8x256xf32> to vector<1x8xf32>
    %cst_7 = arith.constant 3.906250e-03 : f32
    %6 = vector.broadcast %cst_7 : f32 to vector<1x8xf32>
    %7 = arith.mulf %5, %6 : vector<1x8xf32>
    %c0_8 = arith.constant 0 : index
    %c0_9 = arith.constant 0 : index
    %8 = vector.load %arg3[%c0_8, %c0_9] : memref<8x4xf32, #tpu.memory_space<vmem>>, vector<8x4xf32>
    %cst_10 = arith.constant dense<0.000000e+00> : vector<1x4xf32>
    %9 = tpu.matmul %4, %8, %cst_10 {dimension_numbers = #tpu.dot_dimension_numbers<[1], [0], [0], [1], [0, 0, 1, 1], [], []>} : vector<1x8xf32>, vector<8x4xf32>, vector<1x4xf32> -> vector<1x4xf32>
    %c0_11 = arith.constant 0 : index
    %c0_12 = arith.constant 0 : index
    %10 = vector.load %arg4[%c0_11, %c0_12] : memref<8x4xf32, #tpu.memory_space<vmem>>, vector<8x4xf32>
    %cst_13 = arith.constant dense<0.000000e+00> : vector<1x4xf32>
    %11 = tpu.matmul %7, %10, %cst_13 {dimension_numbers = #tpu.dot_dimension_numbers<[1], [0], [0], [1], [0, 0, 1, 1], [], []>} : vector<1x8xf32>, vector<8x4xf32>, vector<1x4xf32> -> vector<1x4xf32>
    %12 = arith.addf %9, %11 : vector<1x4xf32>
    %c0_14 = arith.constant 0 : index
    %c0_15 = arith.constant 0 : index
    %13 = vector.load %arg5[%c0_14, %c0_15] : memref<1x4xf32, #tpu.memory_space<vmem>>, vector<1x4xf32>
    %14 = arith.addf %12, %13 : vector<1x4xf32>
    %cst_16 = arith.constant 0.000000e+00 : f32
    %15 = vector.broadcast %cst_16 : f32 to vector<1x4xf32>
    %16 = arith.maximumf %14, %15 : vector<1x4xf32>
    %c0_17 = arith.constant 0 : index
    %c0_18 = arith.constant 0 : index
    %17 = vector.load %arg6[%c0_17, %c0_18] : memref<4x64xf32, #tpu.memory_space<vmem>>, vector<4x64xf32>
    %cst_19 = arith.constant dense<0.000000e+00> : vector<1x64xf32>
    %18 = tpu.matmul %16, %17, %cst_19 {dimension_numbers = #tpu.dot_dimension_numbers<[1], [0], [0], [1], [0, 0, 1, 1], [], []>} : vector<1x4xf32>, vector<4x64xf32>, vector<1x64xf32> -> vector<1x64xf32>
    %c0_20 = arith.constant 0 : index
    %c0_21 = arith.constant 0 : index
    %19 = vector.load %arg7[%c0_20, %c0_21] : memref<1x64xf32, #tpu.memory_space<vmem>>, vector<1x64xf32>
    %20 = arith.addf %18, %19 : vector<1x64xf32>
    %21 = arith.negf %20 : vector<1x64xf32>
    %22 = math.exp %21 : vector<1x64xf32>
    %cst_22 = arith.constant 1.000000e+00 : f32
    %23 = vector.broadcast %cst_22 : f32 to vector<1x64xf32>
    %24 = arith.addf %23, %22 : vector<1x64xf32>
    %25 = arith.divf %23, %24 : vector<1x64xf32>
    %c0_23 = arith.constant 0 : index
    %c0_24 = arith.constant 0 : index
    %26 = vector.load %arg8[%c0_23, %c0_24] : memref<64x8xf32, #tpu.memory_space<vmem>>, vector<64x8xf32>
    %cst_25 = arith.constant dense<0.000000e+00> : vector<1x8xf32>
    %27 = tpu.matmul %25, %26, %cst_25 {dimension_numbers = #tpu.dot_dimension_numbers<[1], [0], [0], [1], [0, 0, 1, 1], [], []>} : vector<1x64xf32>, vector<64x8xf32>, vector<1x8xf32> -> vector<1x8xf32>
    %28 = vector.shape_cast %0 : vector<1x8x256xf32> to vector<8x256xf32>
    %cst_26 = arith.constant dense<0.000000e+00> : vector<1x256xf32>
    %29 = tpu.matmul %27, %28, %cst_26 {dimension_numbers = #tpu.dot_dimension_numbers<[1], [0], [0], [1], [0, 0, 1, 1], [], []>} : vector<1x8xf32>, vector<8x256xf32>, vector<1x256xf32> -> vector<1x256xf32>
    %c0_27 = arith.constant 0 : index
    %c0_28 = arith.constant 0 : index
    %30 = vector.load %arg9[%c0_27, %c0_28] : memref<1x1xf32, #tpu.memory_space<vmem>>, vector<1x1xf32>
    %31 = vector.broadcast %30 : vector<1x1xf32> to vector<1x256xf32>
    %32 = arith.addf %29, %31 : vector<1x256xf32>
    %33 = arith.negf %32 : vector<1x256xf32>
    %34 = math.exp %33 : vector<1x256xf32>
    %cst_29 = arith.constant 1.000000e+00 : f32
    %35 = vector.broadcast %cst_29 : f32 to vector<1x256xf32>
    %36 = arith.addf %35, %34 : vector<1x256xf32>
    %37 = arith.divf %35, %36 : vector<1x256xf32>
    %38 = vector.shape_cast %1 : vector<1x8x256xf32> to vector<8x256xf32>
    %39 = vector.broadcast %37 : vector<1x256xf32> to vector<8x256xf32>
    %40 = arith.mulf %38, %39 : vector<8x256xf32>
    %c0_30 = arith.constant 0 : index
    %c0_31 = arith.constant 0 : index
    %c0_32 = arith.constant 0 : index
    %41 = vector.load %arg10[%c0_30, %c0_31, %c0_32] : memref<1x8x256xf32, #tpu.memory_space<vmem>>, vector<1x8x256xf32>
    %42 = vector.shape_cast %41 : vector<1x8x256xf32> to vector<8x256xf32>
    %43 = vector.shape_cast %40 : vector<8x256xf32> to vector<1x8x256xf32>
    tpu.vector_store %arg10[%c0_30, %c0_31, %c0_32], %43 {strides = array<i32>} : memref<1x8x256xf32, #tpu.memory_space<vmem>>, vector<1x8x256xf32>,
    return
  }
  func.func @transform_0(%arg0: i32) -> (i32, i32, i32) {
    %c0_i32 = arith.constant 0 : i32
    %c0_i32_0 = arith.constant 0 : i32
    %c0_i32_1 = arith.constant 0 : i32
    return %arg0, %c0_i32, %c0_i32_0 : i32, i32, i32
  }
  func.func @transform_1(%arg0: i32) -> (i32, i32, i32) {
    %c0_i32 = arith.constant 0 : i32
    %c0_i32_0 = arith.constant 0 : i32
    %c0_i32_1 = arith.constant 0 : i32
    return %arg0, %c0_i32, %c0_i32_0 : i32, i32, i32
  }
  func.func @transform_2(%arg0: i32) -> (i32, i32) {
    %c0_i32 = arith.constant 0 : i32
    %c0_i32_0 = arith.constant 0 : i32
    %c0_i32_1 = arith.constant 0 : i32
    return %c0_i32, %c0_i32_0 : i32, i32
  }
  func.func @transform_3(%arg0: i32) -> (i32, i32) {
    %c0_i32 = arith.constant 0 : i32
    %c0_i32_0 = arith.constant 0 : i32
    %c0_i32_1 = arith.constant 0 : i32
    return %c0_i32, %c0_i32_0 : i32, i32
  }
  func.func @transform_4(%arg0: i32) -> (i32, i32) {
    %c0_i32 = arith.constant 0 : i32
    %c0_i32_0 = arith.constant 0 : i32
    %c0_i32_1 = arith.constant 0 : i32
    return %c0_i32, %c0_i32_0 : i32, i32
  }
  func.func @transform_5(%arg0: i32) -> (i32, i32) {
    %c0_i32 = arith.constant 0 : i32
    %c0_i32_0 = arith.constant 0 : i32
    %c0_i32_1 = arith.constant 0 : i32
    return %c0_i32, %c0_i32_0 : i32, i32
  }
  func.func @transform_6(%arg0: i32) -> (i32, i32) {
    %c0_i32 = arith.constant 0 : i32
    %c0_i32_0 = arith.constant 0 : i32
    %c0_i32_1 = arith.constant 0 : i32
    return %c0_i32, %c0_i32_0 : i32, i32
  }
  func.func @transform_7(%arg0: i32) -> (i32, i32) {
    %c0_i32 = arith.constant 0 : i32
    %c0_i32_0 = arith.constant 0 : i32
    %c0_i32_1 = arith.constant 0 : i32
    return %c0_i32, %c0_i32_0 : i32, i32
  }
  func.func @transform_8(%arg0: i32) -> (i32, i32) {
    %c0_i32 = arith.constant 0 : i32
    %c0_i32_0 = arith.constant 0 : i32
    %c0_i32_1 = arith.constant 0 : i32
    return %c0_i32, %c0_i32_0 : i32, i32
  }
  func.func @transform_9(%arg0: i32) -> (i32, i32, i32) {
    %c0_i32 = arith.constant 0 : i32
    %c0_i32_0 = arith.constant 0 : i32
    %c0_i32_1 = arith.constant 0 : i32
    return %arg0, %c0_i32, %c0_i32_0 : i32, i32, i32
  }
}

</mosaic_0001>

<bundles_post_ra>
// kernel: tpu_custom_call.1
= control target key start
LH: loop header
LB: loop body
LE: loop exit
PB: predicated region body
PF: predicated region fallthrough
CT: control target
= control target key end

     0   :  { %s1316_s0 = inlined_call_operand.vmem [shape: f32[2,8,256], index: 0, kind: input, shape index: {}]   ;;  %s1317_s1 = inlined_call_operand.vmem [shape: f32[2,8,256], index: 1, kind: input, shape index: {}]   ;;  %s1318_s2 = inlined_call_operand.vmem [shape: f32[8,4], index: 2, kind: input, shape index: {}]   ;;  %s1319_s3 = inlined_call_operand.vmem [shape: f32[8,4], index: 3, kind: input, shape index: {}]   ;;  %s1320_s4 = inlined_call_operand.vmem [shape: f32[1,4], index: 4, kind: input, shape index: {}]   ;;  %s1321_s5 = inlined_call_operand.vmem [shape: f32[4,64], index: 5, kind: input, shape index: {}]   ;;  %s1322_s6 = inlined_call_operand.vmem [shape: f32[1,64], index: 6, kind: input, shape index: {}]   ;;  %s1323_s7 = inlined_call_operand.vmem [shape: f32[64,8], index: 7, kind: input, shape index: {}]   ;;  %s1324_s8 = inlined_call_operand.<no memory space> [shape: f32[1,1], index: 8, kind: input, shape index: {}]   ;;  %s1325_s9 = inlined_call_operand.hbm [shape: f32[2,8,256], index: 9, kind: output, shape index: {}]  }
   0x1   :  { %v14_v0 = vstv %s1324_s8 }
   0x2   :  { %15 = vst [vmem:[#allocation2] sm:$0x1] %v14_v0 }
   0x3   :  { %16 = vsyncpa [#allocation4], 0 }
   0x4   :  { %18 = vsyncpa [#allocation4 + $0x1], 0  ;;  %s1155_s11 = smov 0   ;;  %s1157_s12 = smov 0  }
   0x5   :  { %s1159_s13 = smov 0   ;;  %s1161_s14 = smov 0  }
   0x6 LB: > { %s1176_s8 = sadd.s32 4294967295, %s1095_s14   ;;  %s889_s15 = sadd.s32 4294967294, %s1095_s14   ;;  %s1095_s14 = sphi %s1161_s14, %s1331_s14   ;;  %s1091_s13 = sphi %s1159_s13, %s1330_s13   ;;  %s1087_s12 = sphi %s1157_s12, %s1329_s12   ;;  %s1083_s11 = sphi %s1155_s11, %s1328_s11  }
   0x7   : > { %s1180_s16 = sadd.s32 1, %s1095_s14   ;;  %s230_s17 = sadd.s32 1, %s1091_s13 }
   0x8   : > { %s227_s18 = ssub.s32 %s1095_s14, %s1180_s16  ;;  %p240_p0 = scmp.ne.s32.totalorder %s1091_s13, %s1087_s12 }
   0x9   : > { %p228_p1 = scmp.eq.s32.totalorder %s227_s18, 0  ;;  %p241_p2 = scmp.eq.s32.totalorder %s1176_s8, 1 }
   0xa   : > { %p246_p3 = scmp.ne.s32.totalorder %s1087_s12, %s1083_s11  ;;  %p247_p4 = scmp.eq.s32.totalorder %s889_s15, 1 }
   0xb   : > { %s1191_s19 = scalar_select %p228_p1, %s1091_s13, %s230_s17  }
   0xc   : > { %p1193_p5 = por %p241_p2, %p240_p0  ;;  %p1197_p6 = por %p247_p4, %p246_p3 }
   0xd   : > { %p892_p7 = scmp.ge.s32.totalorder %s1095_s14, 1  ;;  %p302_p8 = scmp.lt.s32.totalorder %s1095_s14, 3 }
   0xf   : > { %p303_p9 = pnand %p892_p7, %p302_p8 }
  0x10   : > { %p343_p10 = scmp.lt.s32.totalorder (!%p303_p9), %s1176_s8, 1  ;;  %v1097_v7 = vmov (!%p303_p9), 0.0   ;;  %v366_v8 = vld [vmem:[%s1319_s3] sm:$0xff] (!%p303_p9)  ;;  %vm1098_vm0 = vmmov (!%p303_p9), 0   ;;  %v368_v9 = vlaneseq (!%p303_p9)  ;;  %vm374_vm1 = vcmask (!%p303_p9), 64512   ;;  %v614_v30 = vld [vmem:[%s1323_s7 + $0x8] sm:$0xff] (!%p303_p9) }
  0x11   : > { %306 = sbr.rel (%p303_p9) target bundleno = 1110 (0x456), region = 56  ;;  %930 = vmatprep.subr.mxu0 (!%p303_p9), %v1097_v7  ;;  %932 = vmatprep.mubr.msk.f32.mxu0 (!%p303_p9), %vm1098_vm0, %v1097_v7  ;;  %v365_v16 = vld [vmem:[%s1318_s2] sm:$0xff] (!%p303_p9)  ;;  %vm533_vm2 = vcmask (!%p303_p9), 1043456   ;;  %vm529_vm3 = vcmask (!%p303_p9), 31744   ;;  %v1099_v32 = vmov (!%p303_p9), 0.0|0.0   ;;  %v615_v33 = vld [vmem:[%s1323_s7 + $0x10] sm:$0xff] (!%p303_p9) }
  0x12   : > { %931 = vmatpush3.msra.mxu0 (!%p303_p9), %v366_v8  ;;  %961 = vmatprep.mubr.msk.f32.mxu1 (!%p303_p9), %vm1098_vm0, %v1097_v7  ;;  %v369_v10 = vand.u32 (!%p303_p9), 127, %v368_v9  ;;  %v1222_v11 = vshrl.u32 (!%p303_p9), %v368_v9, 7  ;;  %v527_v20 = vld [vmem:[%s1321_s5] sm:$0xf] (!%p303_p9)  ;;  %v616_v34 = vld [vmem:[%s1323_s7 + $0x18] sm:$0xff] (!%p303_p9)  ;;  %v618_v37 = vld [vmem:[%s1323_s7 + $0x28] sm:$0xff] (!%p303_p9) }
  0x13   : > { %935 = vmatprep.subr.mxu0 (!%p303_p9), %v1097_v7  ;;  %v524_v24 = vld [vmem:[%s1320_s4] sm:$0x1] (!%p303_p9)  ;;  %964 = vmatprep.subr.bf16.mxu1 (!%p303_p9), %v1099_v32  ;;  %v968_v35 = vpack.c.bf16 (!%p303_p9), %v616_v34, %v615_v33  ;;  %v619_v39 = vld [vmem:[%s1323_s7 + $0x30] sm:$0xff] (!%p303_p9)  ;;  %v620_v40 = vld [vmem:[%s1323_s7 + $0x38] sm:$0xff] (!%p303_p9)  ;;  %vm621_vm4 = vcmask (!%p303_p9), 523264   ;;  %v1100_v51 = vmov (!%p303_p9), 0  }
  0x14   : > { %v372_v12 = vsub.s32 (!%p303_p9), %v369_v10, %v1222_v11  ;;  %v613_v29 = vld [vmem:[%s1323_s7] sm:$0xff] (!%p303_p9)  ;;  %v974_v41 = vpack.c.bf16 (!%p303_p9), %v620_v40, %v619_v39  ;;  %1019 = vset.pattern.permute.xlu1 (!%p303_p9), %v1100_v51  ;;  %1020 = vset.pattern.permute.xlu0 (!%p303_p9), %v1100_v51  ;;  %v703_v54 = vsub.s32 (!%p303_p9), 0, %v1222_v11  ;;  %s340_s30 = sand.u32 (!%p303_p9), 1, %s1087_s12   ;;  %s914_s15 = sshll.u32 (!%p303_p9), %s1176_s8, 8 }
  0x15   : > { %v965_v31 = vpack.c.bf16 (!%p303_p9), %v614_v30, %v613_v29  ;;  %v617_v36 = vld [vmem:[%s1323_s7 + $0x20] sm:$0xff] (!%p303_p9)  ;;  %s893_s10 = sshll.u32 (!%p303_p9), %s340_s30, 4  ;;  %s1274_s24 = scalar_lea.hbm (!%p303_p9), %s1325_s9, %s914_s15 }
  0x16   : > { %v971_v38 = vpack.c.bf16 (!%p303_p9), %v618_v37, %v617_v36  ;;  %v528_v42 = vld [vmem:[%s1322_s6] sm:$0x1] (!%p303_p9)  ;;  %s342_s17 = scalar_lea.vmem (!%p303_p9), [#allocation3], %s893_s10 }
  0x17   : > { %966 = vmatpush3.bf16.msra.mxu1 (!%p303_p9), %v965_v31  ;;  %v695_v50 = vld [vmem:[#allocation2] sm:$0x1] (!%p303_p9)  ;;  %s818_s18 = sshll.u32 (!%p303_p9), %s342_s17, 4  ;;  %s1276_s18 = int_to_ptr.vmem [resolvable:$true] %s818_s18 }
  0x18   : > { %s344_s22 = scalar_select %p343_p10, %s1176_s8, 1  ;;  %967 = vmatprep.subr.bf16.mxu1 %v1099_v32  ;;  %698 = vperm.xlu1 %1019, %v695_v50  }
  0x19   : > { %s804_s8 = scalar_lea.sflag [#allocation4], %s340_s30  ;;  %s1033_s25 = scalar_lea.vmem %s1276_s18, 256 }
  0x1a   : > { %s912_s23 = sshll.u32 %s344_s22, 4  ;;  %p1034_p11 = scmp.ne.s32.totalorder %s1276_s18, %s1033_s25 }
  0x1b   : > { %s352_s26 = scalar_lea.vmem %s1317_s1, %s912_s23  ;;  %s347_s29 = scalar_lea.vmem %s1316_s0, %s912_s23  ;;  %969 = vmatpush3.bf16.msra.mxu1 %v968_v35 }
  0x1c   : > { %v1211_v1 = vld [vmem:[%s352_s26] sm:$0xff]  ;;  %v1213_v2 = vld [vmem:[%s352_s26 + $0x8] sm:$0xff]  ;;  %970 = vmatprep.subr.bf16.mxu1 %v1099_v32  ;;  %p1035_p12 = pnand %p1034_p11, %p1193_p5  ;;  %s1101_s26 = smov [#allocation3]  }
  0x1d   : > { %v353_v3 = vld [vmem:[%s347_s29] sm:$0xff]  ;;  %v361_v4 = vadd.f32 %v1213_v2, %v1211_v1  ;;  %v354_v5 = vld [vmem:[%s347_s29 + $0x8] sm:$0xff]  ;;  %s1037_s27 = sshll.u32 %s1101_s26, 4  ;;  %s1038_s27 = int_to_ptr.vmem [resolvable:$false] %s1037_s27 }
  0x1e   : > { %v357_v6 = vadd.f32 %v354_v5, %v353_v3  ;;  %p1036_p13 = pneg %p1035_p12  ;;  %s1039_s28 = scalar_lea.vmem %s1038_s27, 512 }
  0x1f   : > { %362 = vadd.xlane.f32.xlu0 %v361_v4  ;;  %972 = vmatpush3.bf16.msra.mxu1 %v971_v38  ;;  %p1040_p0 = scmp.lt.s32.totalorder %s1276_s18, %s1038_s27  ;;  %p1041_p1 = scmp.lt.s32.totalorder %s1039_s28, %s1033_s25 }
  0x20   : > { %973 = vmatprep.subr.bf16.mxu1 %v1099_v32 }
  0x21   : > { %p1042_p2 = por %p1041_p1, %p1040_p0 }
  0x23   : > { %358 = vadd.xlane.f32.xlu0 %v357_v6  ;;  %975 = vmatpush3.bf16.msra.mxu1 %v974_v41  ;;  %p1043_p3 = pnand %p1042_p2, %p1036_p13 }
  0x97   : > { %v699_v55 = vpop.permute.xlu1 %698 }
  0x98   : > { %v704_v56 = vrot.slane %v699_v55, %v703_v54 }
  0xac   : > { %v363_v13 = vpop.xlane.xlu0 %362 }
  0xad   : > { %v364_v14 = vmul.f32 0.00390625, %v363_v13 }
  0xaf   : > { %v373_v15 = vrot.slane %v364_v14, %v372_v12 }
  0xb0   : > { %v359_v17 = vpop.xlane.xlu0 %358 }
  0xb1   : > { %v360_v18 = vmul.f32 0.00390625, %v359_v17  ;;  %933 = vmatmul.mubr.msk.f32.vlgmr.msra.gmra.mrb[0].mxu0 %vm374_vm1, %v373_v15 }
  0xb2   : > { %936 = vmatpush3.msra.mxu0 %v365_v16  ;;  %937 = vmatprep.mubr.msk.f32.mxu0 %vm1098_vm0, %v1097_v7 }
  0xb3   : > { %v451_v19 = vrot.slane %v360_v18, %v372_v12  ;;  %940 = vmatprep.subr.mxu0 %v1097_v7 }
  0xb5   : > { %938 = vmatmul.mubr.msk.f32.vlgmr.msra.gmra.mrb[2].mxu0 %vm374_vm1, %v451_v19 }
  0xb6   : > { %942 = vmatprep.mubr.msk.f32.mxu0 %vm1098_vm0, %v1097_v7  ;;  %941 = vmatpush3.msk.msra.mxu0 %vm533_vm2, %v527_v20 }
  0xb7   : > { %708 = vmatprep.subr.mxu0 %v354_v5 }
 0x184   : > { %v443_v21 = vpop.f32.mrb[0].mxu0 }
 0x185   : > { %v934_v22 = vpop.f32.mrb[1].mxu0 }
 0x188   : > { %v520_v23 = vpop.f32.mrb[2].mxu0 }
 0x189   : > { %v521_v25 = vadd.f32 %v520_v23, %v443_v21  ;;  %v939_v26 = vpop.f32.mrb[3].mxu0 }
 0x18b   : > { %v525_v27 = vadd.f32 %v524_v24, %v521_v25 }
 0x18d   : > { %v526_v28 = vmax.f32 %v525_v27, 0.0 }
 0x18f   : > { %943 = vmatmul.mubr.msk.f32.vlgmr.msra.gmra.mrb[4].mxu0 %vm529_vm3, %v526_v28 }
 0x190   : > { %709 = vmatpush1.msra.mxu0 %v353_v3  ;;  %772 = vmatprep.mubr.f32.mxu0 %v1097_v7 }
 0x262   : > { %v603_v43 = vpop.f32.mrb[4].mxu0 }
 0x263   : > { %v604_v44 = vadd.f32 %v603_v43, %v528_v42  ;;  %v944_v45 = vpop.f32.mrb[5].mxu0 }
 0x265   : > { %v902_v46 = vmul.f32 -1.442695, %v604_v44 }
 0x267   : > { %1021 = vpow2.f32 %v902_v46 }
 0x271   : > { %v1022_v47 = vpop.eup %1021 }
 0x272   : > { %v610_v48 = vadd.f32 1.0, %v1022_v47 }
 0x274   : > { %1023 = vrcp.f32 %v610_v48 }
 0x27e   : > { %v1024_v49 = vpop.eup %1023 }
 0x27f   : > { %962 = vmatmul.mubr.msk.f32.vlgmr.msra.gmra.mrb[0].mxu1 %vm621_vm4, %v1024_v49 }
 0x352   : > { %v691_v52 = vpop.f32.mrb[0].mxu1 }
 0x353   : > { %v963_v53 = vpop.f32.mrb[1].mxu1  ;;  %904 = vmatmul.mubr.msk.f32.vlgmr.msra.gmra.mrb[6].mxu0 %vm374_vm1, %v691_v52 }
 0x426   : > { %v774_v57 = vpop.f32.mrb[6].mxu0 }
 0x427   : > { %v775_v58 = vadd.f32 %v774_v57, %v704_v56  ;;  %v776_v59 = vpop.f32.mrb[7].mxu0 }
 0x428   : > { %v777_v60 = vadd.f32 %v776_v59, %v704_v56 }
 0x429   : > { %v905_v61 = vmul.f32 -1.442695, %v775_v58 }
 0x42a   : > { %v906_v62 = vmul.f32 -1.442695, %v777_v60 }
 0x42b   : > { %1025 = vpow2.f32 %v905_v61 }
 0x42c   : > { %1027 = vpow2.f32 %v906_v62 }
 0x435   : > { %v1026_v63 = vpop.eup %1025 }
 0x436   : > { %v1028_v0 = vpop.eup %1027  ;;  %v785_v3 = vadd.f32 1.0, %v1026_v63 }
 0x437   : > { %v786_v4 = vadd.f32 1.0, %v1028_v0 }
 0x438   : > { %1029 = vrcp.f32 %v785_v3 }
 0x439   : > { %1031 = vrcp.f32 %v786_v4 }
 0x442   : > { %v1030_v5 = vpop.eup %1029 }
 0x443   : > { %v1032_v6 = vpop.eup %1031  ;;  %v794_v7 = vrot.slane %v1030_v5, %v703_v54 }
 0x444   : > { %v798_v8 = vrot.slane %v1032_v6, %v703_v54 }
 0x445   : > { %v799_v9 = vmul.f32 %v794_v7, %v1211_v1 }
 0x446   : > { %v800_v10 = vmul.f32 %v798_v8, %v1213_v2 }
 0x447   : > { %801 = vst [vmem:[%s342_s17] sm:$0xff] %v799_v9 }
 0x448   : > { %802 = vst [vmem:[%s342_s17 + $0x8] sm:$0xff] %v800_v10 }
 0x449   : > { %1046 = shalt.err (!%p1043_p3)
}
 0x44a   : > { %s1047_s29 = scalar_lea.hbm %s1274_s24, 256  ;;  %s1051_s15 = scalar_lea.hbm %s1325_s9, 512 }
 0x44b   : > { %p1048_p4 = scmp.ne.s32.totalorder %s1274_s24, %s1047_s29  ;;  %p1052_p9 = scmp.lt.u32.totalorder %s1274_s24, %s1325_s9 }
 0x44c   : > { %p1053_p10 = scmp.lt.u32.totalorder %s1051_s15, %s1047_s29  ;;  %p1055_p12 = scmp.lt.u32.totalorder %s1047_s29, %s1274_s24 }
 0x44d   : > { %p1049_p7 = pnand %p1048_p4, %p1193_p5 }
 0x44e   : > { %p1054_p11 = por %p1053_p10, %p1052_p9 }
 0x44f   : > { %p1050_p8 = pneg %p1049_p7 }
 0x450   : > { %p1056_p13 = por %p1055_p12, %p1054_p11 }
 0x452   : > { %p1057_p0 = pnand %p1056_p13, %p1050_p8 }
 0x454   : > { %1060 = shalt.err (!%p1057_p0)
}
 0x455   : > { %976 = dma.vmem_to_hbm [thread:$0]  (%p1193_p5), %s1276_s18, 256, %s1274_s24, %s804_s8  }
 0x456 PF: > { %p982_p1 = scmp.ge.s32.totalorder %s1095_s14, 2  ;;  %s830_s23 = sand.u32 1, %s1083_s11  }
 0x457   : > { %s831_s25 = scalar_lea.sflag [#allocation4], %s830_s23 }
 0x458   : > { %p979_p2 = pnand %p982_p1, %p1197_p6 }
 0x45a   : > { %1078 = dma.done.wait (!%p979_p2), %s831_s25, 256  }
 0x45b   : > { %1080 = vsyncadd (!%p979_p2), %s831_s25, 4294967040  ;;  %p21_p3 = scmp.ge.s32.totalorder %s1180_s16, 4   ;;  %s1328_s11 = smov %s1087_s12 }
 0x45c   : > { %s1329_s12 = smov %s1091_s13  ;;  %s1330_s13 = smov %s1191_s19 }
 0x45d   : > { %s1331_s14 = smov %s1180_s16  ;;  %23 = sbr.rel (!%p21_p3) target bundleno = 6 (0x6), region = 94 }
 0x464   :  { %836 = vsyncpa [#allocation4], 1 }
 0x465   :  { %838 = vsyncpa [#allocation4 + $0x1], 1 }

</bundles_post_ra>
